<compile_context>
chip_gen: v6e
topology: v6e:2x2x1
jax: 0.10.0
libtpu: 0.0.40
codegen_flags: <defaults>
</compile_context>

<pallas_src>
import jax
import jax.numpy as jnp
from jax.experimental import pallas as pl
from jax.experimental.pallas import tpu as pltpu

_LANES = 128
_MAX_TILE_ROWS = 64   # 64 * 128 = 8192 pixels per grid step (sweepable)


def _ce_kernel(x_ref, t_ref, loss_ref):
    """Per-pixel cross entropy for one (rows, 128) pixel tile.

    x_ref    : (C, TR, 128)  logits   (class on leading axis, pixels dense)
    t_ref    : (TR, 128)     int32 class labels
    loss_ref : (TR, 128)     float32 per-pixel CE loss
    """
    num_classes = x_ref.shape[0]
    t = t_ref[...]

    # running max over classes (elementwise over full-vreg pixel planes, VPU only)
    m = x_ref[0].astype(jnp.float32)
    for c in range(1, num_classes):
        m = jnp.maximum(m, x_ref[c].astype(jnp.float32))

    # sum of exp and target-logit gather, unrolled over classes
    s = jnp.zeros_like(m)
    tgt = jnp.zeros_like(m)
    for c in range(num_classes):
        xc = x_ref[c].astype(jnp.float32)
        s = s + jnp.exp(xc - m)
        tgt = jnp.where(t == c, xc, tgt)

    # -log_softmax[target] = logsumexp(x) - x[target]
    loss_ref[...] = m + jnp.log(s) - tgt


def per_pixel_cross_entropy(logits_nchw, target_nhw):
    """Flattened per-pixel CE losses, shape (N*H*W,), float32."""
    N, C, H, W = logits_nchw.shape
    HW = H * W

    # Pixel tiling: pad HW up to a multiple of 128 lanes, then up to a
    # multiple of the row-tile.  No transpose; reshapes are free on NCHW.
    rows_total = pl.cdiv(HW, _LANES)
    tile_rows = min(_MAX_TILE_ROWS, rows_total)
    rows_pad = pl.cdiv(rows_total, tile_rows) * tile_rows
    hw_pad = rows_pad * _LANES

    x = logits_nchw.reshape(N, C, HW)
    t = target_nhw.reshape(N, HW).astype(jnp.int32)
    if hw_pad != HW:
        x = jnp.pad(x, ((0, 0), (0, 0), (0, hw_pad - HW)))
        t = jnp.pad(t, ((0, 0), (0, hw_pad - HW)))  # pads with class 0; sliced off below
    x = x.reshape(N, C, rows_pad, _LANES)
    t = t.reshape(N, rows_pad, _LANES)

    grid = (N, rows_pad // tile_rows)

    p_pad = N * rows_pad * _LANES
    cost = pl.CostEstimate(
        flops=int(p_pad * (3 * C + 5)),
        transcendentals=int(p_pad * (C + 1)),
        bytes_accessed=int(p_pad * C * x.dtype.itemsize + p_pad * 4 * 2),
    )

    loss = pl.pallas_call(
        _ce_kernel,
        out_shape=jax.ShapeDtypeStruct((N, rows_pad, _LANES), jnp.float32),
        grid_spec=pltpu.PrefetchScalarGridSpec(
            num_scalar_prefetch=0,
            grid=grid,
            in_specs=[
                # leading None squeezes the batch dim out of the kernel Ref
                pl.BlockSpec((None, C, tile_rows, _LANES),
                             lambda n, i: (n, 0, i, 0)),
                pl.BlockSpec((None, tile_rows, _LANES),
                             lambda n, i: (n, i, 0)),
            ],
            out_specs=pl.BlockSpec((None, tile_rows, _LANES),
                                   lambda n, i: (n, i, 0)),
        ),
        compiler_params=pltpu.CompilerParams(
            dimension_semantics=("parallel", "parallel")),
        cost_estimate=cost,
    )(x, t)

    # drop padded pixels, restore torch's (N*H*W,) flattening order
    return loss.reshape(N, hw_pad)[:, :HW].reshape(-1)


def bootstrapped_ce(logits, target, it=0, *, start_warm=10000, end_warm=40000,
                    top_p=0.15):
    """Forward pass of BootstrappedCE. Returns (loss, this_p).

    `it` must be a static Python int (it drives Python-level branching,
    exactly like the PyTorch module).
    """
    raw_loss = per_pixel_cross_entropy(logits, target)      # (P,)
    num_pixels = raw_loss.shape[0]

    if it < start_warm:
        return raw_loss.mean(), 1.0

    if it > end_warm:
        this_p = top_p
    else:
        this_p = top_p + (1 - top_p) * ((end_warm - it) / (end_warm - start_warm))

    k = max(1, int(num_pixels * this_p))
    # TODO(synk): top_k has no clean Pallas TPU equivalent; for very large P a
    # two-pass histogram/threshold masked-mean would beat this O(P log P) op.
    topk_vals, _ = jax.lax.top_k(raw_loss, k)
    return topk_vals.mean(), this_p


def _reference_per_pixel_ce(logits, target):
    # pure-JAX reference for verification
    logp = jax.nn.log_softmax(logits.astype(jnp.float32), axis=1)  # (N,C,H,W)
    gathered = jnp.take_along_axis(logp, target[:, None].astype(jnp.int32), axis=1)
    return (-gathered[:, 0]).reshape(-1)


if __name__ == "__main__":
    key = jax.random.PRNGKey(0)
    k1, k2 = jax.random.split(key)

    N, C, H, W = 2, 4, 16, 16
    logits = jax.random.normal(k1, (N, C, H, W), dtype=jnp.float32)
    target = jax.random.randint(k2, (N, H, W), 0, C, dtype=jnp.int32)

    # warm phase: plain mean cross entropy
    loss_warm, p_warm = bootstrapped_ce(logits, target, it=0)
    loss_warm = jax.block_until_ready(loss_warm)

    # bootstrapped phase: top-p hardest pixels
    loss_boot, p_boot = bootstrapped_ce(logits, target, it=50000)
    loss_boot = jax.block_until_ready(loss_boot)

    # correctness check against pure-JAX reference
    ref = _reference_per_pixel_ce(logits, target)
    got = jax.block_until_ready(per_pixel_cross_entropy(logits, target))
    assert jnp.allclose(got, ref, atol=1e-5, rtol=1e-5), "per-pixel CE mismatch"
    assert jnp.allclose(loss_warm, ref.mean(), atol=1e-5, rtol=1e-5)
    kk = max(1, int(ref.shape[0] * 0.15))
    assert jnp.allclose(loss_boot, jax.lax.top_k(ref, kk)[0].mean(),
                        atol=1e-5, rtol=1e-5)

    # odd-shape path (pixel padding branch): H*W not a multiple of 128
    H2, W2 = 9, 13
    logits2 = jax.random.normal(k1, (N, C, H2, W2), dtype=jnp.float32)
    target2 = jax.random.randint(k2, (N, H2, W2), 0, C, dtype=jnp.int32)
    ref2 = _reference_per_pixel_ce(logits2, target2)
    got2 = jax.block_until_ready(per_pixel_cross_entropy(logits2, target2))
    assert jnp.allclose(got2, ref2, atol=1e-5, rtol=1e-5), "padded CE mismatch"

    print("KERNEL_OK")
</pallas_src>

<mosaic_0001>
module attributes {stable_mosaic.version = 11 : i64} {
  func.func @_ce_kernel(%arg0: i32, %arg1: i32, %arg2: memref<1x4x2x128xf32, #tpu.memory_space<vmem>>, %arg3: memref<1x2x128xi32, #tpu.memory_space<vmem>>, %arg4: memref<1x2x128xf32, #tpu.memory_space<vmem>>) attributes {dimension_semantics = [#tpu.dimension_semantics<parallel>, #tpu.dimension_semantics<parallel>], iteration_bounds = array<i64: 2, 1>, scalar_prefetch = 0 : i64, scratch_operands = 0 : i64, tpu.core_type = #tpu.core_type<tc>, window_params = [{transform_indices = @transform_0, window_bounds = array<i64: 1, 4, 2, 128>}, {transform_indices = @transform_1, window_bounds = array<i64: 1, 2, 128>}, {transform_indices = @transform_2, window_bounds = array<i64: 1, 2, 128>}]} {
    %c0 = arith.constant 0 : index
    %c0_0 = arith.constant 0 : index
    %c0_1 = arith.constant 0 : index
    %0 = vector.load %arg3[%c0, %c0_0, %c0_1] : memref<1x2x128xi32, #tpu.memory_space<vmem>>, vector<1x2x128xi32>
    %1 = vector.shape_cast %0 : vector<1x2x128xi32> to vector<2x128xi32>
    %c0_2 = arith.constant 0 : index
    %c0_3 = arith.constant 0 : index
    %c0_4 = arith.constant 0 : index
    %c0_5 = arith.constant 0 : index
    %2 = vector.load %arg2[%c0_2, %c0_3, %c0_4, %c0_5] : memref<1x4x2x128xf32, #tpu.memory_space<vmem>>, vector<1x1x2x128xf32>
    %3 = vector.shape_cast %2 : vector<1x1x2x128xf32> to vector<2x128xf32>
    %c0_6 = arith.constant 0 : index
    %c1 = arith.constant 1 : index
    %c0_7 = arith.constant 0 : index
    %c0_8 = arith.constant 0 : index
    %4 = vector.load %arg2[%c0_6, %c1, %c0_7, %c0_8] : memref<1x4x2x128xf32, #tpu.memory_space<vmem>>, vector<1x1x2x128xf32>
    %5 = vector.shape_cast %4 : vector<1x1x2x128xf32> to vector<2x128xf32>
    %6 = arith.maximumf %3, %5 : vector<2x128xf32>
    %c0_9 = arith.constant 0 : index
    %c2 = arith.constant 2 : index
    %c0_10 = arith.constant 0 : index
    %c0_11 = arith.constant 0 : index
    %7 = vector.load %arg2[%c0_9, %c2, %c0_10, %c0_11] : memref<1x4x2x128xf32, #tpu.memory_space<vmem>>, vector<1x1x2x128xf32>
    %8 = vector.shape_cast %7 : vector<1x1x2x128xf32> to vector<2x128xf32>
    %9 = arith.maximumf %6, %8 : vector<2x128xf32>
    %c0_12 = arith.constant 0 : index
    %c3 = arith.constant 3 : index
    %c0_13 = arith.constant 0 : index
    %c0_14 = arith.constant 0 : index
    %10 = vector.load %arg2[%c0_12, %c3, %c0_13, %c0_14] : memref<1x4x2x128xf32, #tpu.memory_space<vmem>>, vector<1x1x2x128xf32>
    %11 = vector.shape_cast %10 : vector<1x1x2x128xf32> to vector<2x128xf32>
    %12 = arith.maximumf %9, %11 : vector<2x128xf32>
    %cst = arith.constant 0.000000e+00 : f32
    %13 = vector.broadcast %cst : f32 to vector<2x128xf32>
    %cst_15 = arith.constant 0.000000e+00 : f32
    %14 = vector.broadcast %cst_15 : f32 to vector<2x128xf32>
    %c0_16 = arith.constant 0 : index
    %c0_17 = arith.constant 0 : index
    %c0_18 = arith.constant 0 : index
    %c0_19 = arith.constant 0 : index
    %15 = vector.load %arg2[%c0_16, %c0_17, %c0_18, %c0_19] : memref<1x4x2x128xf32, #tpu.memory_space<vmem>>, vector<1x1x2x128xf32>
    %16 = vector.shape_cast %15 : vector<1x1x2x128xf32> to vector<2x128xf32>
    %17 = arith.subf %16, %12 : vector<2x128xf32>
    %18 = math.exp %17 : vector<2x128xf32>
    %19 = arith.addf %13, %18 : vector<2x128xf32>
    %c0_i32 = arith.constant 0 : i32
    %20 = vector.broadcast %c0_i32 : i32 to vector<2x128xi32>
    %21 = arith.cmpi eq, %1, %20 : vector<2x128xi32>
    %22 = arith.select %21, %16, %14 : vector<2x128xi1>, vector<2x128xf32>
    %c0_20 = arith.constant 0 : index
    %c1_21 = arith.constant 1 : index
    %c0_22 = arith.constant 0 : index
    %c0_23 = arith.constant 0 : index
    %23 = vector.load %arg2[%c0_20, %c1_21, %c0_22, %c0_23] : memref<1x4x2x128xf32, #tpu.memory_space<vmem>>, vector<1x1x2x128xf32>
    %24 = vector.shape_cast %23 : vector<1x1x2x128xf32> to vector<2x128xf32>
    %25 = arith.subf %24, %12 : vector<2x128xf32>
    %26 = math.exp %25 : vector<2x128xf32>
    %27 = arith.addf %19, %26 : vector<2x128xf32>
    %c1_i32 = arith.constant 1 : i32
    %28 = vector.broadcast %c1_i32 : i32 to vector<2x128xi32>
    %29 = arith.cmpi eq, %1, %28 : vector<2x128xi32>
    %30 = arith.select %29, %24, %22 : vector<2x128xi1>, vector<2x128xf32>
    %c0_24 = arith.constant 0 : index
    %c2_25 = arith.constant 2 : index
    %c0_26 = arith.constant 0 : index
    %c0_27 = arith.constant 0 : index
    %31 = vector.load %arg2[%c0_24, %c2_25, %c0_26, %c0_27] : memref<1x4x2x128xf32, #tpu.memory_space<vmem>>, vector<1x1x2x128xf32>
    %32 = vector.shape_cast %31 : vector<1x1x2x128xf32> to vector<2x128xf32>
    %33 = arith.subf %32, %12 : vector<2x128xf32>
    %34 = math.exp %33 : vector<2x128xf32>
    %35 = arith.addf %27, %34 : vector<2x128xf32>
    %c2_i32 = arith.constant 2 : i32
    %36 = vector.broadcast %c2_i32 : i32 to vector<2x128xi32>
    %37 = arith.cmpi eq, %1, %36 : vector<2x128xi32>
    %38 = arith.select %37, %32, %30 : vector<2x128xi1>, vector<2x128xf32>
    %c0_28 = arith.constant 0 : index
    %c3_29 = arith.constant 3 : index
    %c0_30 = arith.constant 0 : index
    %c0_31 = arith.constant 0 : index
    %39 = vector.load %arg2[%c0_28, %c3_29, %c0_30, %c0_31] : memref<1x4x2x128xf32, #tpu.memory_space<vmem>>, vector<1x1x2x128xf32>
    %40 = vector.shape_cast %39 : vector<1x1x2x128xf32> to vector<2x128xf32>
    %41 = arith.subf %40, %12 : vector<2x128xf32>
    %42 = math.exp %41 : vector<2x128xf32>
    %43 = arith.addf %35, %42 : vector<2x128xf32>
    %c3_i32 = arith.constant 3 : i32
    %44 = vector.broadcast %c3_i32 : i32 to vector<2x128xi32>
    %45 = arith.cmpi eq, %1, %44 : vector<2x128xi32>
    %46 = arith.select %45, %40, %38 : vector<2x128xi1>, vector<2x128xf32>
    %47 = math.log %43 : vector<2x128xf32>
    %48 = arith.addf %12, %47 : vector<2x128xf32>
    %49 = arith.subf %48, %46 : vector<2x128xf32>
    %c0_32 = arith.constant 0 : index
    %c0_33 = arith.constant 0 : index
    %c0_34 = arith.constant 0 : index
    %50 = vector.load %arg4[%c0_32, %c0_33, %c0_34] : memref<1x2x128xf32, #tpu.memory_space<vmem>>, vector<1x2x128xf32>
    %51 = vector.shape_cast %50 : vector<1x2x128xf32> to vector<2x128xf32>
    %52 = vector.shape_cast %49 : vector<2x128xf32> to vector<1x2x128xf32>
    tpu.vector_store %arg4[%c0_32, %c0_33, %c0_34], %52 {strides = array<i32>} : memref<1x2x128xf32, #tpu.memory_space<vmem>>, vector<1x2x128xf32>,
    return
  }
  func.func @transform_0(%arg0: i32, %arg1: i32) -> (i32, i32, i32, i32) {
    %c0_i32 = arith.constant 0 : i32
    %c0_i32_0 = arith.constant 0 : i32
    %c0_i32_1 = arith.constant 0 : i32
    return %arg0, %c0_i32, %arg1, %c0_i32_0 : i32, i32, i32, i32
  }
  func.func @transform_1(%arg0: i32, %arg1: i32) -> (i32, i32, i32) {
    %c0_i32 = arith.constant 0 : i32
    %c0_i32_0 = arith.constant 0 : i32
    return %arg0, %arg1, %c0_i32 : i32, i32, i32
  }
  func.func @transform_2(%arg0: i32, %arg1: i32) -> (i32, i32, i32) {
    %c0_i32 = arith.constant 0 : i32
    %c0_i32_0 = arith.constant 0 : i32
    return %arg0, %arg1, %c0_i32 : i32, i32, i32
  }
}

</mosaic_0001>

<bundles_post_ra>
// kernel: tpu_custom_call.1
= control target key start
LH: loop header
LB: loop body
LE: loop exit
PB: predicated region body
PF: predicated region fallthrough
CT: control target
= control target key end

     0   :  { %7 = vsyncpa [#allocation3], 0  ;;  %s807_s0 = inlined_call_operand.hbm [shape: f32[2,4,2,128], index: 0, kind: input, shape index: {}]   ;;  %s808_s1 = inlined_call_operand.hbm [shape: s32[2,2,128], index: 1, kind: input, shape index: {}]   ;;  %s809_s2 = inlined_call_operand.hbm [shape: f32[2,2,128], index: 2, kind: output, shape index: {}]  }
   0x1   :  { %9 = vsyncpa [#allocation3 + $0x1], 0 }
   0x2   :  { %10 = vsyncpa [#allocation6], 0 }
   0x3   :  { %12 = vsyncpa [#allocation6 + $0x1], 0 }
   0x4   :  { %13 = vsyncpa [#allocation4], 0 }
   0x5   :  { %15 = vsyncpa [#allocation4 + $0x1], 0  ;;  %s641_s9 = smov 0   ;;  %s643_s10 = smov 0  }
   0x6   :  { %s645_s11 = smov 0   ;;  %s647_s12 = smov 0  }
   0x7   :  { %s649_s13 = smov 0   ;;  %s651_s14 = smov 0  }
   0x8 LB: > { %s379_s15 = sadd.s32 4294967295, %s619_s14   ;;  %s380_s16 = sadd.s32 4294967294, %s619_s14   ;;  %s619_s14 = sphi %s651_s14, %s21_s14   ;;  %s615_s13 = sphi %s649_s13, %s821_s13   ;;  %s611_s12 = sphi %s647_s12, %s820_s12   ;;  %s607_s11 = sphi %s645_s11, %s819_s11   ;;  %s603_s10 = sphi %s643_s10, %s818_s10   ;;  %s599_s9 = sphi %s641_s9, %s817_s9  }
   0x9   : > { %s33_s17 = sadd.s32 1, %s615_s13  ;;  %s42_s18 = sadd.s32 1, %s607_s11 }
   0xa   : > { %p35_p0 = scmp.ge.s32.totalorder %s33_s17, 2  ;;  %p49_p1 = scmp.ne.s32.totalorder %s607_s11, %s603_s10 }
   0xb   : > { %p50_p2 = scmp.eq.s32.totalorder %s619_s14, 0  ;;  %p55_p3 = scmp.ne.s32.totalorder %s603_s10, %s599_s9 }
   0xc   : > { %s823_s17 = smov (%p35_p0, %s33_s17), 0  ;;  %p56_p5 = scmp.eq.s32.totalorder %s379_s15, 0 }
   0xd   : > { %p682_p4 = por %p50_p2, %p49_p1  ;;  %s37_s20 = ssub.s32 %s615_s13, %s823_s17 }
   0xe   : > { %p109_p6 = scmp.eq.s32.totalorder %s379_s15, 1  ;;  %p40_p7 = scmp.eq.s32.totalorder %s37_s20, 0 }
   0xf   : > { %p688_p8 = por %p56_p5, %p55_p3  ;;  %p115_p10 = scmp.eq.s32.totalorder %s380_s16, 1 }
  0x10   : > { %p692_p9 = por %p109_p6, %p49_p1  ;;  %p417_p13 = scmp.lt.s32.totalorder %s619_s14, 2 }
  0x11   : > { %s697_s23 = scalar_select %p40_p7, %s607_s11, %s42_s18  }
  0x12   : > { %p699_p11 = por %p115_p10, %p55_p3  ;;  %s706_s25 = sand.u32 1, %s607_s11  }
  0x13   : > { %s383_s26 = sshll.u32 %s706_s25, 3  ;;  %s399_s27 = sshll.u32 %s615_s13, 7 }
  0x14   : > { %s146_s30 = scalar_lea.hbm %s807_s0, %s399_s27  ;;  %s139_s3 = scalar_lea.vmem [#allocation2], %s383_s26 }
  0x15   : > { %s147_s4 = sshll.u32 %s139_s3, 4  ;;  %p715_p0 = pnand %p417_p13, %p682_p4  ;;  %s148_s4 = int_to_ptr.vmem [resolvable:$true] %s147_s4 }
  0x16   : > { %p388_p1 = scmp.ge.s32.totalorder %s619_s14, 1  ;;  %s136_s6 = scalar_lea.sflag [#allocation3], %s706_s25 }
  0x17   : > { %p481_p2 = pneg %p715_p0  ;;  %s492_s7 = scalar_lea.vmem %s148_s4, 128 }
  0x18   : > { %p493_p3 = scmp.ne.s32.totalorder %s148_s4, %s492_s7  ;;  %s621_s8 = smov [#allocation2]  }
  0x19   : > { %s497_s15 = sshll.u32 %s621_s8, 4  ;;  %s498_s15 = int_to_ptr.vmem [resolvable:$false] %s497_s15 }
  0x1a   : > { %p495_p5 = pnand %p493_p3, %p481_p2  ;;  %s499_s16 = scalar_lea.vmem %s498_s15, 256 }
  0x1b   : > { %p500_p4 = scmp.lt.s32.totalorder %s148_s4, %s498_s15  ;;  %p501_p7 = scmp.lt.s32.totalorder %s499_s16, %s492_s7 }
  0x1c   : > { %p496_p6 = pneg %p495_p5 }
  0x1d   : > { %p502_p10 = por %p501_p7, %p500_p4 }
  0x1f   : > { %p503_p13 = pnand %p502_p10, %p496_p6 }
  0x21   : > { %506 = shalt.err (!%p503_p13)
}
  0x22   : > { %s622_s18 = smov 32   ;;  %s623_s19 = smov 2  }
  0x23   : > { %409 = dma.hbm_to_vmem [thread:$0]  (!%p715_p0), %s146_s30, 128, %s148_s4, %s136_s6, %s622_s18, %s622_s18, %s623_s19  }
  0x24   : > { %p174_p3 = scmp.lt.s32.totalorder %s619_s14, 3  ;;  %s386_s20 = sshll.u32 %s706_s25, 1 }
  0x25   : > { %s387_s26 = sshll.u32 %s615_s13, 5  ;;  %s161_s7 = scalar_lea.vmem [#allocation5], %s386_s20 }
  0x26   : > { %p733_p5 = pnand %p388_p1, %p174_p3  ;;  %s167_s3 = scalar_lea.hbm %s808_s1, %s387_s26 }
  0x27   : > { %s169_s8 = sshll.u32 %s161_s7, 4  ;;  %s158_s15 = scalar_lea.sflag [#allocation6], %s706_s25  ;;  %s170_s8 = int_to_ptr.vmem [resolvable:$true] %s169_s8 }
  0x28   : > { %s520_s16 = scalar_lea.vmem %s170_s8, 32  ;;  %s624_s30 = smov [#allocation5]  }
  0x29   : > { %p521_p6 = scmp.ne.s32.totalorder %s170_s8, %s520_s16  ;;  %s525_s4 = sshll.u32 %s624_s30, 4  ;;  %s526_s4 = int_to_ptr.vmem [resolvable:$false] %s525_s4 }
  0x2a   : > { %s527_s6 = scalar_lea.vmem %s526_s4, 64  ;;  %p528_p1 = scmp.lt.s32.totalorder %s170_s8, %s526_s4 }
  0x2b   : > { %p523_p4 = pnand %p521_p6, %p481_p2  ;;  %p529_p10 = scmp.lt.s32.totalorder %s527_s6, %s520_s16 }
  0x2d   : > { %p524_p7 = pneg %p523_p4  ;;  %p530_p13 = por %p529_p10, %p528_p1 }
  0x2f   : > { %p531_p3 = pnand %p530_p13, %p524_p7 }
  0x31   : > { %534 = shalt.err (!%p531_p3)
}
  0x32   : > { %412 = dma.hbm_to_vmem [thread:$0]  (!%p715_p0), %s167_s3, 32, %s170_s8, %s158_s15  }
  0x33   : > { %178 = sbr.rel (%p733_p5) target bundleno = 125 (0x7d), region = 28  ;;  %s749_s25 = sand.u32 (!%p733_p5), 1, %s603_s10  }
  0x34   : > { %s389_s18 = sshll.u32 (!%p733_p5), %s749_s25, 3  ;;  %s181_s19 = scalar_lea.sflag (!%p733_p5), [#allocation3], %s749_s25 }
  0x35   : > { %s184_s20 = scalar_lea.vmem (!%p733_p5), [#allocation2], %s389_s18 }
  0x38   : > { %586 = dma.done.wait (%p688_p8), %s181_s19, 128  }
  0x39   : > { %588 = vsyncadd (%p688_p8), %s181_s19, 4294967168  ;;  %s390_s5 = sshll.u32 %s749_s25, 1  ;;  %s190_s26 = scalar_lea.sflag [#allocation6], %s749_s25 }
  0x3a   : > { %s193_s27 = scalar_lea.vmem [#allocation5], %s390_s5 }
  0x3b   : > { %590 = dma.done.wait (%p688_p8), %s190_s26, 32  }
  0x3c   : > { %592 = vsyncadd (%p688_p8), %s190_s26, 4294967264  ;;  %v220_v0 = vld [vmem:[%s184_s20] sm:$0x3]  ;;  %v392_v1 = vld [vmem:[%s184_s20 + $0x2] sm:$0x3]  ;;  %s218_s21 = scalar_lea.vmem [#allocation7], %s390_s5 }
  0x3d   : > { %v223_v2 = vmax.f32 %v220_v0, %v392_v1  ;;  %v393_v3 = vld [vmem:[%s184_s20 + $0x4] sm:$0x3]  ;;  %v394_v4 = vld [vmem:[%s184_s20 + $0x6] sm:$0x3]  ;;  %v219_v22 = vld [vmem:[%s193_s27] sm:$0x3] }
  0x3e   : > { %vm234_vm0 = vcmp.eq.s32.totalorder %v219_v22, 0  ;;  %vm240_vm1 = vcmp.eq.s32.totalorder %v219_v22, 1  ;;  %vm246_vm2 = vcmp.eq.s32.totalorder %v219_v22, 2  ;;  %vm252_vm3 = vcmp.eq.s32.totalorder %v219_v22, 3  ;;  %s274_s28 = sshll.u32 %s218_s21, 4  ;;  %s396_s29 = sshll.u32 %s611_s12, 5  ;;  %s275_s28 = int_to_ptr.vmem [resolvable:$true] %s274_s28 }
  0x3f   : > { %v226_v5 = vmax.f32 %v223_v2, %v393_v3  ;;  %v235_v23 = vsel %vm234_vm0, %v220_v0, 0.0  ;;  %s272_s8 = scalar_lea.hbm %s809_s2, %s396_s29  ;;  %s260_s15 = scalar_lea.sflag [#allocation4], %s749_s25 }
  0x40   : > { %v241_v24 = vsel %vm240_vm1, %v392_v1, %v235_v23  ;;  %s535_s16 = scalar_lea.vmem %s275_s28, 32  ;;  %s625_s30 = smov [#allocation7]  }
  0x41   : > { %v229_v6 = vmax.f32 %v226_v5, %v394_v4  ;;  %v247_v25 = vsel %vm246_vm2, %v393_v3, %v241_v24  ;;  %p536_p8 = scmp.ne.s32.totalorder %s275_s28, %s535_s16  ;;  %s539_s4 = sshll.u32 %s625_s30, 4  ;;  %s540_s4 = int_to_ptr.vmem [resolvable:$false] %s539_s4 }
  0x42   : > { %v253_v28 = vsel %vm252_vm3, %v394_v4, %v247_v25  ;;  %s541_s6 = scalar_lea.vmem %s540_s4, 64  ;;  %p542_p5 = scmp.lt.s32.totalorder %s275_s28, %s540_s4 }
  0x43   : > { %v230_v7 = vsub.f32 %v220_v0, %v229_v6  ;;  %v236_v8 = vsub.f32 %v392_v1, %v229_v6  ;;  %v242_v9 = vsub.f32 %v393_v3, %v229_v6  ;;  %v248_v10 = vsub.f32 %v394_v4, %v229_v6  ;;  %p537_p0 = pnand %p536_p8, %p692_p9  ;;  %p543_p6 = scmp.lt.s32.totalorder %s541_s6, %s535_s16 }
  0x45   : > { %v231_v11 = vmul.f32 1.442695, %v230_v7  ;;  %v237_v12 = vmul.f32 1.442695, %v236_v8  ;;  %v243_v13 = vmul.f32 1.442695, %v242_v9  ;;  %p538_p2 = pneg %p537_p0  ;;  %p544_p4 = por %p543_p6, %p542_p5 }
  0x46   : > { %v249_v14 = vmul.f32 1.442695, %v248_v10 }
  0x47   : > { %469 = vpow2.f32 %v231_v11  ;;  %p545_p7 = pnand %p544_p4, %p538_p2 }
  0x48   : > { %471 = vpow2.f32 %v237_v12 }
  0x49   : > { %473 = vpow2.f32 %v243_v13 }
  0x4a   : > { %475 = vpow2.f32 %v249_v14 }
  0x54   : > { %v470_v15 = vpop.eup %469 }
  0x55   : > { %v472_v16 = vpop.eup %471 }
  0x56   : > { %v474_v17 = vpop.eup %473  ;;  %v239_v18 = vadd.f32 %v472_v16, %v470_v15 }
  0x57   : > { %v476_v19 = vpop.eup %475 }
  0x58   : > { %v245_v20 = vadd.f32 %v474_v17, %v239_v18 }
  0x5a   : > { %v251_v21 = vadd.f32 %v476_v19, %v245_v20 }
  0x5c   : > { %477 = vlog2.f32 %v251_v21 }
  0x69   : > { %v478_v26 = vpop.eup %477 }
  0x6a   : > { %v255_v27 = vmul.f32 0.6931472, %v478_v26 }
  0x6c   : > { %v256_v29 = vadd.f32 %v255_v27, %v229_v6 }
  0x6e   : > { %v257_v30 = vsub.f32 %v256_v29, %v253_v28 }
  0x70   : > { %258 = vst [vmem:[%s218_s21] sm:$0x3] %v257_v30 }
  0x71   : > { %548 = shalt.err (!%p545_p7)
}
  0x72   : > { %s549_s12 = scalar_lea.hbm %s272_s8, 32  ;;  %s553_s19 = scalar_lea.hbm %s809_s2, 64 }
  0x73   : > { %p550_p1 = scmp.ne.s32.totalorder %s272_s8, %s549_s12  ;;  %p554_p3 = scmp.lt.s32.totalorder %s272_s8, %s809_s2 }
  0x74   : > { %p555_p8 = scmp.lt.s32.totalorder %s553_s19, %s549_s12 }
  0x75   : > { %p551_p10 = pnand %p550_p1, %p692_p9 }
  0x76   : > { %p556_p0 = por %p555_p8, %p554_p3 }
  0x77   : > { %p552_p13 = pneg %p551_p10 }
  0x79   : > { %p557_p12 = pnand %p556_p0, %p552_p13 }
  0x7b   : > { %560 = shalt.err (!%p557_p12)
}
  0x7c   : > { %404 = dma.vmem_to_hbm [thread:$0]  (%p692_p9), %s275_s28, 32, %s272_s8, %s260_s15  }
  0x7d PF: > { %s286_s26 = sand.u32 1, %s599_s9   ;;  %p816_p2 = scmp.ge.s32.totalorder %s619_s14, 2 }
  0x7e   : > { %s287_s27 = scalar_lea.sflag [#allocation4], %s286_s26 }
  0x7f   : > { %p414_p5 = pnand %p816_p2, %p699_p11 }
  0x81   : > { %p415_p6 = pneg %p414_p5 }
  0x83   : > { %594 = dma.done.wait (%p415_p6), %s287_s27, 32  }
  0x84   : > { %596 = vsyncadd (%p415_p6), %s287_s27, 4294967264  ;;  %s21_s14 = sadd.s32 1, %s619_s14   ;;  %s817_s9 = smov %s603_s10 }
  0x85   : > { %p18_p4 = scmp.ge.s32.totalorder %s21_s14, 4   ;;  %s818_s10 = smov %s607_s11 }
  0x86   : > { %s819_s11 = smov %s697_s23  ;;  %s820_s12 = smov %s615_s13 }
  0x87   : > { %s821_s13 = smov %s823_s17  ;;  %20 = sbr.rel (!%p18_p4) target bundleno = 8 (0x8), region = 89 }
  0x8c   :  { %292 = vsyncpa [#allocation3], 1 }
  0x8d   :  { %294 = vsyncpa [#allocation3 + $0x1], 1 }
  0x8e   :  { %295 = vsyncpa [#allocation6], 1 }
  0x8f   :  { %297 = vsyncpa [#allocation6 + $0x1], 1 }
  0x90   :  { %298 = vsyncpa [#allocation4], 1 }
  0x91   :  { %300 = vsyncpa [#allocation4 + $0x1], 1 }

</bundles_post_ra>
